<compile_context>
chip_gen: v7x
topology: tpu7x:2x2x1
jax: 0.10.0
libtpu: 0.0.40
codegen_flags: <defaults>
</compile_context>

<pallas_src>
import functools

import jax
import jax.numpy as jnp
from jax.experimental import pallas as pl
from jax.experimental.pallas import tpu as pltpu

LANE = 128

# Per-generation streaming config: shards across TensorCores and the per-input
# block byte budget (2 inputs x 2 pipeline buffers x block must stay under the
# scoped-VMEM default of the generation).
_GEN_CONFIG = {
    "v5e": dict(num_shards=1, max_block_bytes=2 << 20),   # 2x2x2 =  8 MiB
    "v6e": dict(num_shards=1, max_block_bytes=4 << 20),   # 2x2x4 = 16 MiB
    "v7x": dict(num_shards=2, max_block_bytes=4 << 20),   # per-TC 16 MiB
    None:  dict(num_shards=1, max_block_bytes=1 << 20),   # conservative default
}


def _tpu_generation():
    """Best-effort TPU generation detection from device_kind."""
    try:
        kind = jax.devices()[0].device_kind.lower()
    except Exception:  # pragma: no cover - defensive
        return None
    if "v5 lite" in kind or "v5e" in kind or "v5lite" in kind:
        return "v5e"
    if "v6" in kind:
        return "v6e"
    if "7" in kind:  # e.g. "tpu7x"
        return "v7x"
    return None


def _sub_align(*dtypes):
    """Sublane alignment for the widest packing among the given dtypes."""
    return max(8 * max(1, 4 // jnp.dtype(d).itemsize) for d in dtypes)


def _sse_kernel(x_ref, t_ref, out_ref, acc_ref, *, rows, block_rows,
                blocks_per_shard):
    """Sum of squared differences over one (block_rows, 128) tile pair.

    rows / block_rows / blocks_per_shard are compile-time Python ints.
    acc_ref: (8, 128) f32 VMEM vector accumulator (pure VPU adds per step).
    out_ref: (1, 1) f32 SMEM partial sum for the current shard; written once,
             on the last inner grid step (single cross-lane reduce per shard).
    Out-of-range rows (partial edge block, or a clamped overshoot block on the
    last shard) are masked to zero using the logical block index.
    """
    c = pl.program_id(0)
    i = pl.program_id(1)

    @pl.when(i == 0)
    def _():
        acc_ref[...] = jnp.zeros_like(acc_ref)

    # Logical first row of this block (may exceed `rows` for the edge block).
    row0 = (c * blocks_per_shard + i) * block_rows
    row_ids = row0 + jax.lax.broadcasted_iota(jnp.int32, (block_rows, LANE), 0)
    valid = row_ids < rows

    d = x_ref[...].astype(jnp.float32) - t_ref[...].astype(jnp.float32)
    sq = jnp.where(valid, d * d, jnp.float32(0.0))
    # (block_rows, 128) -> (block_rows//8, 8, 128); summing the leading axis is
    # vreg-wise elementwise addition (VPU only, no per-step XLU reduce).
    acc_ref[...] += jnp.sum(sq.reshape(-1, 8, LANE), axis=0)

    @pl.when(i == pl.num_programs(1) - 1)
    def _():
        out_ref[0, 0] = jnp.sum(acc_ref[...])


def _sse_pallas(x2d, t2d, *, max_block_bytes=None):
    """Sum of squared differences of two (rows, 128) slabs via Pallas."""
    rows = int(x2d.shape[0])
    isx = jnp.dtype(x2d.dtype).itemsize
    ist = jnp.dtype(t2d.dtype).itemsize
    sub_align = _sub_align(x2d.dtype, t2d.dtype)

    gen = _tpu_generation()
    cfg = _GEN_CONFIG.get(gen, _GEN_CONFIG[None])
    num_shards = cfg["num_shards"]
    blk_bytes = (max_block_bytes if max_block_bytes is not None
                 else cfg["max_block_bytes"])

    # Block rows: as large as the byte budget allows, multiple of sub_align,
    # never larger than the slab itself (edge raggedness handled by the mask).
    cap_rows = max(sub_align,
                   (blk_bytes // (LANE * max(isx, ist))) // sub_align * sub_align)
    block_rows = min(cap_rows, sub_align * pl.cdiv(rows, num_shards * sub_align))
    block_rows = min(block_rows, max(sub_align, (rows // sub_align) * sub_align))

    total_blocks = pl.cdiv(rows, block_rows)
    num_shards = min(num_shards, total_blocks)          # no fully-empty shards
    blocks_per_shard = pl.cdiv(total_blocks, num_shards)

    # Clamp so a (rare) overshoot block on the last shard stays in-bounds; the
    # in-kernel mask (based on the *logical* block index) zeroes it anyway.
    def idx_map(c, i):
        return (jnp.minimum(c * blocks_per_shard + i, total_blocks - 1), 0)

    # NOTE: if profiling ever shows exposed DMA at shard boundaries, sweep
    # pipeline_mode=pl.Buffered(3) here (and account for the extra buffer in
    # the VMEM budget).
    in_spec = pl.BlockSpec((block_rows, LANE), idx_map)

    core_par = getattr(pltpu, "CORE_PARALLEL", None)
    if gen == "v7x" and num_shards > 1 and core_par is not None:
        # Split the shard axis across the two TensorCores on v7x.
        dim_sem = (core_par, getattr(pltpu, "ARBITRARY", "arbitrary"))
    else:
        dim_sem = ("arbitrary", "arbitrary")

    # Explicit VMEM budget: 2 inputs x 2 pipeline buffers x block + accumulator,
    # doubled for headroom, clamped to stay under every generation's physical
    # VMEM (v7x: 64 MiB per TC).
    footprint = 2 * block_rows * LANE * (isx + ist) + 8 * LANE * 4
    vmem_limit = int(min(48 << 20, max(16 << 20, 2 * footprint)))

    kernel = functools.partial(_sse_kernel, rows=rows, block_rows=block_rows,
                               blocks_per_shard=blocks_per_shard)

    partials = pl.pallas_call(
        kernel,
        out_shape=jax.ShapeDtypeStruct((num_shards, 1), jnp.float32),
        grid_spec=pltpu.PrefetchScalarGridSpec(
            num_scalar_prefetch=0,
            grid=(num_shards, blocks_per_shard),
            in_specs=[in_spec, in_spec],
            out_specs=pl.BlockSpec((1, 1), lambda c, i: (c, 0),
                                   memory_space=pltpu.SMEM),
            scratch_shapes=[pltpu.VMEM((8, LANE), jnp.float32)],
        ),
        compiler_params=pltpu.CompilerParams(
            dimension_semantics=dim_sem,
            vmem_limit_bytes=vmem_limit,
        ),
        cost_estimate=pl.CostEstimate(
            flops=3 * rows * LANE,
            transcendentals=0,
            bytes_accessed=rows * LANE * (isx + ist) + 4 * num_shards,
        ),
    )(x2d, t2d)

    return jnp.sum(partials)


def _split_main_tail(a):
    """Flatten (bitcast) into a lane-dense (rows, 128) slab + <128-elem tail.

    No padding copy is made: the main part is a reshape of (a prefix of) the
    flat array; the tail (numel % 128 elements) is returned separately.
    """
    flat = a.reshape(-1)
    n = flat.shape[0]
    main_rows = n // LANE
    rem = n - main_rows * LANE
    head = flat if rem == 0 else flat[: main_rows * LANE]
    main = head.reshape(main_rows, LANE) if main_rows > 0 else None
    tail = flat[main_rows * LANE:] if rem else None
    return main, tail


def _mse_from_parts(x_main, x_tail, t_main, t_tail, numel, min_pallas_numel,
                    max_block_bytes):
    sse = jnp.float32(0.0)
    if x_main is not None:
        sub_align = _sub_align(x_main.dtype, t_main.dtype)
        use_pallas = (numel >= min_pallas_numel
                      and x_main.shape[0] >= sub_align)
        if use_pallas:
            sse = sse + _sse_pallas(x_main, t_main,
                                    max_block_bytes=max_block_bytes)
        else:
            d = x_main.astype(jnp.float32) - t_main.astype(jnp.float32)
            sse = sse + jnp.sum(d * d)
    if x_tail is not None:
        d = x_tail.astype(jnp.float32) - t_tail.astype(jnp.float32)
        sse = sse + jnp.sum(d * d)
    return sse / jnp.float32(numel)


class ContentLoss:
    """JAX/Pallas analogue of the PyTorch ContentLoss module.

    The target is a detached constant, so its flattened slab is prepared ONCE
    at construction; each forward call only reshapes the input and runs the
    streaming SSE kernel.  __call__ stores .loss and returns the input
    unchanged, matching the PyTorch module's forward semantics.
    """

    def __init__(self, target, *, min_pallas_numel=1 << 18,
                 max_block_bytes=None):
        self.target = jax.lax.stop_gradient(target)        # .detach()
        self._min_pallas_numel = min_pallas_numel
        self._max_block_bytes = max_block_bytes
        self._t_main, self._t_tail = _split_main_tail(self.target)
        self.loss = None

    def __call__(self, x):
        assert x.shape == self.target.shape, (
            "input and target must have the same shape")
        x_main, x_tail = _split_main_tail(x)
        self.loss = _mse_from_parts(
            x_main, x_tail, self._t_main, self._t_tail, x.size,
            self._min_pallas_numel, self._max_block_bytes)
        return x


def content_loss(x, target, *, min_pallas_numel=1 << 18, max_block_bytes=None):
    """Functional form: returns (input unchanged, mse_loss(input, target))."""
    assert x.shape == target.shape, "input and target must have the same shape"
    x_main, x_tail = _split_main_tail(x)
    t_main, t_tail = _split_main_tail(target)
    loss = _mse_from_parts(x_main, x_tail, t_main, t_tail, x.size,
                           min_pallas_numel, max_block_bytes)
    return x, loss


if __name__ == "__main__":
    root = jax.random.PRNGKey(0)

    def run_case(idx, shape, **kw):
        k_in, k_tgt = jax.random.split(jax.random.fold_in(root, idx))
        x = jax.random.normal(k_in, shape, dtype=jnp.float32)
        target = jax.random.normal(k_tgt, shape, dtype=jnp.float32)

        module = ContentLoss(target, **kw)        # target slab cached once
        out = module(x)
        jax.block_until_ready((out, module.loss))

        ref_loss = jnp.mean((x - target) ** 2)
        assert jnp.allclose(module.loss, ref_loss, rtol=1e-4, atol=1e-6), (
            shape, module.loss, ref_loss)
        assert jnp.array_equal(out, x)

        # Functional form exercised too.
        out2, loss2 = content_loss(x, target, **kw)
        jax.block_until_ready((out2, loss2))
        assert jnp.allclose(loss2, ref_loss, rtol=1e-4, atol=1e-6)

    # Primary small NCHW demo shape: batch=2, channels=4, spatial=16.
    # (Forced onto the Pallas path; in production such tiny maps take XLA.)
    run_case(0, (2, 4, 16, 16), min_pallas_numel=0)
    # Multi-block accumulation within a shard (small forced block size).
    run_case(1, (2, 8, 64, 64), min_pallas_numel=0,
             max_block_bytes=64 * LANE * 4)
    # Ragged shape: in-kernel row mask for the partial edge block, plus a
    # <128-element lane tail handled by the wrapper (no padding copy).
    run_case(2, (3, 5, 7, 11), min_pallas_numel=0)
    # Large enough to take the default (production) threshold path.
    run_case(3, (2, 64, 64, 64))

    print("KERNEL_OK")
</pallas_src>

<mosaic_0001>
module attributes {stable_mosaic.version = 11 : i64} {
  func.func @_sse_kernel(%arg0: i32, %arg1: i32, %arg2: memref<16x128xf32, #tpu.memory_space<vmem>>, %arg3: memref<16x128xf32, #tpu.memory_space<vmem>>, %arg4: memref<1x1xf32, #tpu.memory_space<smem>>, %arg5: memref<8x128xf32, #tpu.memory_space<vmem>>) attributes {dimension_semantics = [#tpu.dimension_semantics<arbitrary>, #tpu.dimension_semantics<arbitrary>], iteration_bounds = array<i64: 1, 1>, scalar_prefetch = 0 : i64, scratch_operands = 1 : i64, tpu.core_type = #tpu.core_type<tc>, window_params = [{transform_indices = @transform_0, window_bounds = array<i64: 16, 128>}, {transform_indices = @transform_1, window_bounds = array<i64: 16, 128>}, {transform_indices = @transform_2, window_bounds = array<i64: 1, 1>}]} {
    %c0_i32 = arith.constant 0 : i32
    %0 = arith.cmpi eq, %arg1, %c0_i32 : i32
    %1 = arith.extui %0 : i1 to i32
    %c0_i32_0 = arith.constant 0 : i32
    %2 = arith.cmpi ne, %1, %c0_i32_0 : i32
    scf.if %2 {
      %cst_12 = arith.constant 0.000000e+00 : f32
      %25 = vector.broadcast %cst_12 : f32 to vector<8x128xf32>
      %c0_13 = arith.constant 0 : index
      %c0_14 = arith.constant 0 : index
      %26 = vector.load %arg5[%c0_13, %c0_14] : memref<8x128xf32, #tpu.memory_space<vmem>>, vector<8x128xf32>
      tpu.vector_store %arg5[%c0_13, %c0_14], %25 {strides = array<i32>} : memref<8x128xf32, #tpu.memory_space<vmem>>, vector<8x128xf32>,
    } else {
    }
    %c1_i32 = arith.constant 1 : i32
    %3 = arith.muli %arg0, %c1_i32 : i32
    %4 = arith.addi %3, %arg1 : i32
    %c16_i32 = arith.constant 16 : i32
    %5 = arith.muli %4, %c16_i32 : i32
    %6 = tpu.iota {dimensions = array<i32: 0>} : vector<16x128xi32>
    %7 = vector.broadcast %5 : i32 to vector<16x128xi32>
    %8 = arith.addi %7, %6 : vector<16x128xi32>
    %c16_i32_1 = arith.constant 16 : i32
    %9 = vector.broadcast %c16_i32_1 : i32 to vector<16x128xi32>
    %10 = arith.cmpi slt, %8, %9 : vector<16x128xi32>
    %c0 = arith.constant 0 : index
    %c0_2 = arith.constant 0 : index
    %11 = vector.load %arg2[%c0, %c0_2] : memref<16x128xf32, #tpu.memory_space<vmem>>, vector<16x128xf32>
    %c0_3 = arith.constant 0 : index
    %c0_4 = arith.constant 0 : index
    %12 = vector.load %arg3[%c0_3, %c0_4] : memref<16x128xf32, #tpu.memory_space<vmem>>, vector<16x128xf32>
    %13 = arith.subf %11, %12 : vector<16x128xf32>
    %14 = arith.mulf %13, %13 : vector<16x128xf32>
    %cst = arith.constant 0.000000e+00 : f32
    %15 = vector.broadcast %cst : f32 to vector<16x128xf32>
    %16 = arith.select %10, %14, %15 : vector<16x128xi1>, vector<16x128xf32>
    %c0_5 = arith.constant 0 : index
    %c0_6 = arith.constant 0 : index
    %17 = vector.load %arg5[%c0_5, %c0_6] : memref<8x128xf32, #tpu.memory_space<vmem>>, vector<8x128xf32>
    %18 = vector.shape_cast %16 : vector<16x128xf32> to vector<2x8x128xf32>
    %cst_7 = arith.constant dense<0.000000e+00> : vector<8x128xf32>
    %19 = vector.multi_reduction <add>, %18, %cst_7 [0] : vector<2x8x128xf32> to vector<8x128xf32>
    %20 = arith.addf %17, %19 : vector<8x128xf32>
    %c0_8 = arith.constant 0 : index
    %c0_9 = arith.constant 0 : index
    %21 = vector.load %arg5[%c0_8, %c0_9] : memref<8x128xf32, #tpu.memory_space<vmem>>, vector<8x128xf32>
    tpu.vector_store %arg5[%c0_8, %c0_9], %20 {strides = array<i32>} : memref<8x128xf32, #tpu.memory_space<vmem>>, vector<8x128xf32>,
    %c0_i32_10 = arith.constant 0 : i32
    %22 = arith.cmpi eq, %arg1, %c0_i32_10 : i32
    %23 = arith.extui %22 : i1 to i32
    %c0_i32_11 = arith.constant 0 : i32
    %24 = arith.cmpi ne, %23, %c0_i32_11 : i32
    scf.if %24 {
      %c0_12 = arith.constant 0 : index
      %c0_13 = arith.constant 0 : index
      %25 = vector.load %arg5[%c0_12, %c0_13] : memref<8x128xf32, #tpu.memory_space<vmem>>, vector<8x128xf32>
      %26 = vector.shape_cast %25 : vector<8x128xf32> to vector<1x8x128xf32>
      %cst_14 = arith.constant dense<0.000000e+00> : vector<1xf32>
      %27 = vector.multi_reduction <add>, %26, %cst_14 [1, 2] : vector<1x8x128xf32> to vector<1xf32>
      %28 = vector.shape_cast %27 : vector<1xf32> to vector<1x1x1xf32>
      %29 = vector.extract %28[0, 0, 0] : f32 from vector<1x1x1xf32>
      %c0_15 = arith.constant 0 : index
      %c0_16 = arith.constant 0 : index
      %30 = memref.load %arg4[%c0_15, %c0_16] : memref<1x1xf32, #tpu.memory_space<smem>>
      memref.store %29, %arg4[%c0_15, %c0_16] : memref<1x1xf32, #tpu.memory_space<smem>>
    } else {
    }
    return
  }
  func.func @transform_0(%arg0: i32, %arg1: i32) -> (i32, i32) {
    %c1_i32 = arith.constant 1 : i32
    %0 = arith.muli %arg0, %c1_i32 : i32
    %1 = arith.addi %0, %arg1 : i32
    %c0_i32 = arith.constant 0 : i32
    %2 = arith.minsi %1, %c0_i32 : i32
    %c0_i32_0 = arith.constant 0 : i32
    %c0_i32_1 = arith.constant 0 : i32
    return %2, %c0_i32_0 : i32, i32
  }
  func.func @transform_1(%arg0: i32, %arg1: i32) -> (i32, i32) {
    %c1_i32 = arith.constant 1 : i32
    %0 = arith.muli %arg0, %c1_i32 : i32
    %1 = arith.addi %0, %arg1 : i32
    %c0_i32 = arith.constant 0 : i32
    %2 = arith.minsi %1, %c0_i32 : i32
    %c0_i32_0 = arith.constant 0 : i32
    %c0_i32_1 = arith.constant 0 : i32
    return %2, %c0_i32_0 : i32, i32
  }
  func.func @transform_2(%arg0: i32, %arg1: i32) -> (i32, i32) {
    %c0_i32 = arith.constant 0 : i32
    %c0_i32_0 = arith.constant 0 : i32
    return %arg0, %c0_i32 : i32, i32
  }
}

</mosaic_0001>

<bundles_post_ra>
// kernel: tpu_custom_call.1
= control target key start
LH: loop header
LB: loop body
LE: loop exit
PB: predicated region body
PF: predicated region fallthrough
CT: control target
= control target key end

     0   :  { %7 = vsyncpa [#allocation4], 0  ;;  %s246_s0 = inlined_call_operand.hbm [shape: f32[16,128], index: 0, kind: input, shape index: {}]   ;;  %s247_s1 = inlined_call_operand.hbm [shape: f32[16,128], index: 1, kind: input, shape index: {}]   ;;  %s248_s2 = inlined_call_operand.hbm [shape: f32[1,1], index: 2, kind: output, shape index: {}]  }
   0x1   :  { %8 = vsyncpa [#allocation7], 0 }
   0x2   :  { %9 = vsyncpa [#allocation5], 0  ;;  %s190_s9 = smov [#allocation3]   ;;  %s130_s13 = scalar_lea.hbm %s246_s0, 256 }
   0x3   :  { %s21_s10 = sshll.u32 %s190_s9, 4  ;;  %p131_p0 = scmp.ne.s32.totalorder %s246_s0, %s130_s13  ;;  %s22_s10 = int_to_ptr.vmem [resolvable:$true] %s21_s10 }
   0x4   :  { %p134_p1 = scmp.lt.u32.totalorder %s130_s13, %s246_s0 }
   0x6   :  { %p136_p2 = pnand %p134_p1, %p131_p0 }
   0x8   :  { %139 = shalt.err (!%p136_p2)
}
   0x9   :  { %s140_s18 = scalar_lea.vmem %s22_s10, 256  ;;  %p145_p4 = scmp.lt.s32.totalorder %s22_s10, %s22_s10 }
   0xa   :  { %p141_p3 = scmp.ne.s32.totalorder %s22_s10, %s140_s18  ;;  %p146_p5 = scmp.lt.s32.totalorder %s140_s18, %s140_s18 }
   0xc   :  { %p147_p6 = por %p146_p5, %p145_p4 }
   0xe   :  { %p148_p7 = pnand %p147_p6, %p141_p3 }
  0x10   :  { %151 = shalt.err (!%p148_p7)
}
  0x11   :  { %s191_s19 = smov 128   ;;  %s192_s20 = smov 8  }
  0x12   :  { %27 = dma.hbm_to_vmem [thread:$0]  %s246_s0, 256, %s22_s10, [#allocation4], %s191_s19, %s191_s19, %s192_s20  }
  0x13   :  { %s193_s23 = smov [#allocation6]   ;;  %s152_s27 = scalar_lea.hbm %s247_s1, 256 }
  0x14   :  { %s39_s24 = sshll.u32 %s193_s23, 4  ;;  %p153_p8 = scmp.ne.s32.totalorder %s247_s1, %s152_s27  ;;  %s40_s24 = int_to_ptr.vmem [resolvable:$true] %s39_s24 }
  0x15   :  { %p156_p9 = scmp.lt.u32.totalorder %s152_s27, %s247_s1 }
  0x17   :  { %p158_p10 = pnand %p156_p9, %p153_p8 }
  0x19   :  { %161 = shalt.err (!%p158_p10)
}
  0x1a   :  { %s162_s4 = scalar_lea.vmem %s40_s24, 256  ;;  %p167_p12 = scmp.lt.s32.totalorder %s40_s24, %s40_s24 }
  0x1b   :  { %p163_p11 = scmp.ne.s32.totalorder %s40_s24, %s162_s4  ;;  %p168_p13 = scmp.lt.s32.totalorder %s162_s4, %s162_s4 }
  0x1d   :  { %p169_p0 = por %p168_p13, %p167_p12 }
  0x1f   :  { %p170_p1 = pnand %p169_p0, %p163_p11 }
  0x21   :  { %173 = shalt.err (!%p170_p1)
}
  0x22   :  { %45 = dma.hbm_to_vmem [thread:$0]  %s247_s1, 256, %s40_s24, [#allocation7], %s191_s19, %s191_s19, %s192_s20  }
  0x23   :  { %184 = dma.done.wait [#allocation4], 256  }
  0x24   :  { %185 = vsyncadd [#allocation4], 4294967040 }
  0x25   :  { %186 = dma.done.wait [#allocation7], 256  }
  0x26   :  { %187 = vsyncadd [#allocation7], 4294967040  ;;  %v75_v0 = vld [vmem:[#allocation3] sm:$0xff]  ;;  %v76_v1 = vld [vmem:[#allocation3 + $0x8] sm:$0xff]  ;;  %s174_s8 = scalar_lea.hbm %s248_s2, 16 }
  0x27   :  { %v77_v2 = vld [vmem:[#allocation6] sm:$0xff]  ;;  %v78_v3 = vld [vmem:[#allocation6 + $0x8] sm:$0xff]  ;;  %p175_p2 = scmp.ne.s32.totalorder %s248_s2, %s174_s8  ;;  %p178_p3 = scmp.lt.u32.totalorder %s174_s8, %s248_s2 }
  0x28   :  { %v79_v4 = vsub.f32 %v75_v0, %v77_v2  ;;  %v80_v5 = vsub.f32 %v76_v1, %v78_v3 }
  0x29   :  { %p180_p4 = pnand %p178_p3, %p175_p2 }
  0x2a   :  { %v81_v6 = vmul.f32 %v79_v4, %v79_v4  ;;  %v82_v7 = vmul.f32 %v80_v5, %v80_v5 }
  0x2c   :  { %v86_v8 = vadd.f32 %v82_v7, %v81_v6 }
  0x2e   :  { %93 = vadd.xlane.f32.xlu0 %v86_v8 }
  0xbb   :  { %v94_v9 = vpop.xlane.xlu0 %93 }
  0xbc   :  { %v95_v10 = vrot.slane %v94_v9, 4 }
  0xbe   :  { %v96_v11 = vadd.f32 %v95_v10, %v94_v9 }
  0xc0   :  { %v97_v12 = vrot.slane %v96_v11, 2 }
  0xc2   :  { %v98_v13 = vadd.f32 %v97_v12, %v96_v11 }
  0xc4   :  { %v99_v14 = vrot.slane %v98_v13, 1 }
  0xc6   :  { %v100_v15 = vadd.f32 %v99_v14, %v98_v13 }
  0xc8   :  { %123 = vpush %v100_v15 }
  0xf9   :  { %s124_s1 = spop %123 }
  0xfa   :  { %103 = sst [smem:[#allocation8]] %s124_s1 }
  0xfb   :  { %183 = shalt.err (!%p180_p4)
}
  0xfc   :  { %s194_s13 = smov [#allocation8]  }
  0xfd   :  { %111 = dma.smem_to_hbm %s194_s13, 16, %s248_s2, [#allocation5]  }
  0xfe   :  { %188 = dma.done.wait [#allocation5], 16  }
  0xff   :  { %189 = vsyncadd [#allocation5], 4294967280 }
 0x100   :  { %115 = sfence }
 0x101   :  { %116 = vsyncpa [#allocation4], 1 }
 0x102   :  { %117 = vsyncpa [#allocation7], 1 }
 0x103   :  { %118 = vsyncpa [#allocation5], 1 }

</bundles_post_ra>
